<compile_context>
chip_gen: v6e
topology: v6e:2x2x1
jax: 0.10.0
libtpu: 0.0.40
codegen_flags: <defaults>
</compile_context>

<pallas_src>
import jax
import jax.numpy as jnp
from jax.experimental import pallas as pl
from jax.experimental.pallas import tpu as pltpu


def _round_up(x, m):
    return ((x + m - 1) // m) * m


def _matmul_relu_kernel(x_ref, w_ref, o_ref):
    # x_ref: [tm, K_pad]        im2col patches tile (lane-dense, 128-multiple)
    # w_ref: [K_pad, C_out_pad] flattened conv weight (VMEM-resident)
    # o_ref: [tm, C_out_pad]    lane-dense output -> unmasked full-width stores
    acc = jnp.dot(x_ref[...], w_ref[...], preferred_element_type=jnp.float32)
    o_ref[...] = jnp.maximum(acc, 0.0).astype(o_ref.dtype)


def conv_relu(x_nchw, weight_oihw, *, stride=1, padding=0):
    """Equivalent of F.relu(F.conv2d(x, w, bias=None, stride, padding))."""
    n, c_in, h, w = x_nchw.shape
    c_out, c_in_w, kh, kw = weight_oihw.shape
    assert c_in == c_in_w

    h_out = (h + 2 * padding - kh) // stride + 1
    w_out = (w + 2 * padding - kw) // stride + 1

    # ---- wrapper-side layout glue -----------------------------------------
    # NCHW -> NHWC, zero-pad spatially.
    x_nhwc = jnp.transpose(x_nchw, (0, 2, 3, 1))
    x_pad = jnp.pad(
        x_nhwc, ((0, 0), (padding, padding), (padding, padding), (0, 0)))

    # im2col: patches[b, oh, ow, (i*kw + j)*c_in + c]
    #       = x_pad[b, oh*stride + i, ow*stride + j, c]
    taps = []
    for i in range(kh):
        for j in range(kw):
            taps.append(jax.lax.slice(
                x_pad,
                (0, i, j, 0),
                (n,
                 i + (h_out - 1) * stride + 1,
                 j + (w_out - 1) * stride + 1,
                 c_in),
                (1, stride, stride, 1)))            # [N, H_out, W_out, C_in]
    patches = jnp.concatenate(taps, axis=-1)         # [N, H_out, W_out, K]

    m = n * h_out * w_out
    k = kh * kw * c_in
    patches = patches.reshape(m, k)

    # Weight OIHW -> [KH, KW, C_in, C_out] -> [K, C_out]; row ordering matches
    # the tap/channel ordering used to build `patches` above.
    w_mat = jnp.transpose(weight_oihw, (2, 3, 1, 0)).reshape(k, c_out)

    # Pad K and C_out to full 128-lane width; pad M to a whole number of tiles.
    # Zero rows/cols contribute nothing and are sliced off afterwards.
    k_pad = _round_up(k, 128)
    c_out_pad = _round_up(c_out, 128)
    tm = min(512, _round_up(m, 8))
    m_pad = _round_up(m, tm)

    patches = jnp.pad(patches, ((0, m_pad - m), (0, k_pad - k)))
    w_mat = jnp.pad(w_mat, ((0, k_pad - k), (0, c_out_pad - c_out)))

    out_padded = pl.pallas_call(
        _matmul_relu_kernel,
        out_shape=jax.ShapeDtypeStruct((m_pad, c_out_pad), x_nchw.dtype),
        grid_spec=pltpu.PrefetchScalarGridSpec(
            num_scalar_prefetch=0,
            grid=(m_pad // tm,),
            in_specs=[
                pl.BlockSpec((tm, k_pad), lambda i: (i, 0)),
                pl.BlockSpec((k_pad, c_out_pad), lambda i: (0, 0)),
            ],
            out_specs=pl.BlockSpec((tm, c_out_pad), lambda i: (i, 0)),
        ),
        compiler_params=pltpu.CompilerParams(
            dimension_semantics=("parallel",)),
    )(patches, w_mat)

    # Drop padding, restore NHWC then NCHW (PyTorch output convention).
    out_nhwc = out_padded[:m, :c_out].reshape(n, h_out, w_out, c_out)
    return jnp.transpose(out_nhwc, (0, 3, 1, 2))


def _reference(x_nchw, weight_oihw, *, stride, padding):
    out = jax.lax.conv_general_dilated(
        x_nchw, weight_oihw,
        window_strides=(stride, stride),
        padding=[(padding, padding), (padding, padding)],
        dimension_numbers=("NCHW", "OIHW", "NCHW"),
    )
    return jnp.maximum(out, 0.0)


if __name__ == "__main__":
    # Small shapes consistent with ConvReLU: batch=2, in_ch=4, out_ch=8,
    # spatial 16x16, kernel_size=3, padding=1, stride=1.
    key = jax.random.PRNGKey(0)
    kx, kw_key = jax.random.split(key)

    N, C_IN, C_OUT, H, W = 2, 4, 8, 16, 16
    KH = KW = 3

    x = jax.random.normal(kx, (N, C_IN, H, W), dtype=jnp.float32)
    # Deterministic Kaiming-ish init for the Conv2d weight (bias=False).
    fan_in = C_IN * KH * KW
    weight = jax.random.normal(kw_key, (C_OUT, C_IN, KH, KW), dtype=jnp.float32)
    weight = weight * (2.0 / fan_in) ** 0.5

    # Main config: stride=1, padding=1 (same-size output).
    out = conv_relu(x, weight, stride=1, padding=1)
    out = jax.block_until_ready(out)
    ref = _reference(x, weight, stride=1, padding=1)
    assert out.shape == ref.shape == (N, C_OUT, H, W)
    assert jnp.allclose(out, ref, atol=1e-4, rtol=1e-4), "mismatch (s=1,p=1)"

    # Secondary sanity check: stride=2, padding=0.
    out2 = conv_relu(x, weight, stride=2, padding=0)
    out2 = jax.block_until_ready(out2)
    ref2 = _reference(x, weight, stride=2, padding=0)
    assert out2.shape == ref2.shape
    assert jnp.allclose(out2, ref2, atol=1e-4, rtol=1e-4), "mismatch (s=2,p=0)"

    print("KERNEL_OK")
</pallas_src>

<mosaic_0001>
module attributes {stable_mosaic.version = 11 : i64} {
  func.func @_matmul_relu_kernel(%arg0: i32, %arg1: memref<512x128xf32, #tpu.memory_space<vmem>>, %arg2: memref<128x128xf32, #tpu.memory_space<vmem>>, %arg3: memref<512x128xf32, #tpu.memory_space<vmem>>) attributes {dimension_semantics = [#tpu.dimension_semantics<parallel>], iteration_bounds = array<i64: 1>, scalar_prefetch = 0 : i64, scratch_operands = 0 : i64, tpu.core_type = #tpu.core_type<tc>, window_params = [{transform_indices = @transform_0, window_bounds = array<i64: 512, 128>}, {pipeline_mode = #tpu.pipeline_mode<synchronous>, transform_indices = @transform_1, window_bounds = array<i64: 128, 128>}, {transform_indices = @transform_2, window_bounds = array<i64: 512, 128>}]} {
    %c0 = arith.constant 0 : index
    %c0_0 = arith.constant 0 : index
    %0 = vector.load %arg1[%c0, %c0_0] : memref<512x128xf32, #tpu.memory_space<vmem>>, vector<512x128xf32>
    %c0_1 = arith.constant 0 : index
    %c0_2 = arith.constant 0 : index
    %1 = vector.load %arg2[%c0_1, %c0_2] : memref<128x128xf32, #tpu.memory_space<vmem>>, vector<128x128xf32>
    %cst = arith.constant dense<0.000000e+00> : vector<512x128xf32>
    %2 = tpu.matmul %0, %1, %cst {dimension_numbers = #tpu.dot_dimension_numbers<[1], [0], [0], [1], [0, 0, 1, 1], [], []>} : vector<512x128xf32>, vector<128x128xf32>, vector<512x128xf32> -> vector<512x128xf32>
    %cst_3 = arith.constant 0.000000e+00 : f32
    %3 = vector.broadcast %cst_3 : f32 to vector<512x128xf32>
    %4 = arith.maximumf %2, %3 : vector<512x128xf32>
    %c0_4 = arith.constant 0 : index
    %c0_5 = arith.constant 0 : index
    %5 = vector.load %arg3[%c0_4, %c0_5] : memref<512x128xf32, #tpu.memory_space<vmem>>, vector<512x128xf32>
    tpu.vector_store %arg3[%c0_4, %c0_5], %4 {strides = array<i32>} : memref<512x128xf32, #tpu.memory_space<vmem>>, vector<512x128xf32>,
    return
  }
  func.func @transform_0(%arg0: i32) -> (i32, i32) {
    %c0_i32 = arith.constant 0 : i32
    %c0_i32_0 = arith.constant 0 : i32
    return %arg0, %c0_i32 : i32, i32
  }
  func.func @transform_1(%arg0: i32) -> (i32, i32) {
    %c0_i32 = arith.constant 0 : i32
    %c0_i32_0 = arith.constant 0 : i32
    %c0_i32_1 = arith.constant 0 : i32
    return %c0_i32, %c0_i32_0 : i32, i32
  }
  func.func @transform_2(%arg0: i32) -> (i32, i32) {
    %c0_i32 = arith.constant 0 : i32
    %c0_i32_0 = arith.constant 0 : i32
    return %arg0, %c0_i32 : i32, i32
  }
}

</mosaic_0001>

<bundles_post_ra>
// kernel: tpu_custom_call.1
= control target key start
LH: loop header
LB: loop body
LE: loop exit
PB: predicated region body
PF: predicated region fallthrough
CT: control target
= control target key end

     0   :  { %7 = vsyncpa [#allocation3], 0  ;;  %s1000_s0 = inlined_call_operand.hbm [shape: f32[512,128], index: 0, kind: input, shape index: {}]   ;;  %s1001_s1 = inlined_call_operand.hbm [shape: f32[128,128], index: 1, kind: input, shape index: {}]   ;;  %s1002_s2 = inlined_call_operand.hbm [shape: f32[512,128], index: 2, kind: output, shape index: {}]  }
   0x1   :  { %8 = vsyncpa [#allocation6], 0 }
   0x2   :  { %9 = vsyncpa [#allocation4], 0  ;;  %s962_s9 = smov [#allocation2]  }
   0x3   :  { %s15_s10 = sshll.u32 %s962_s9, 4  ;;  %s16_s10 = int_to_ptr.vmem [resolvable:$true] %s15_s10 }
   0x4   :  { %s904_s11 = scalar_lea.vmem %s16_s10, 8192  ;;  %p909_p1 = scmp.lt.s32.totalorder %s16_s10, %s16_s10 }
   0x5   :  { %p905_p0 = scmp.ne.s32.totalorder %s16_s10, %s904_s11  ;;  %p910_p2 = scmp.lt.s32.totalorder %s904_s11, %s904_s11 }
   0x7   :  { %p911_p3 = por %p910_p2, %p909_p1 }
   0x9   :  { %p912_p4 = pnand %p911_p3, %p905_p0 }
   0xb   :  { %915 = shalt.err (!%p912_p4)
}
   0xc   :  { %s963_s12 = smov 128   ;;  %s964_s13 = smov 8  }
   0xd   :  { %21 = dma.hbm_to_vmem [thread:$0]  %s1000_s0, 8192, %s16_s10, [#allocation3], %s963_s12, %s963_s12, %s964_s13  }
   0xe   :  { %s965_s16 = smov [#allocation5]  }
   0xf   :  { %s27_s17 = sshll.u32 %s965_s16, 4  ;;  %s28_s17 = int_to_ptr.vmem [resolvable:$true] %s27_s17 }
  0x10   :  { %s924_s18 = scalar_lea.vmem %s28_s17, 2048  ;;  %p929_p6 = scmp.lt.s32.totalorder %s28_s17, %s28_s17 }
  0x11   :  { %p925_p5 = scmp.ne.s32.totalorder %s28_s17, %s924_s18  ;;  %p930_p7 = scmp.lt.s32.totalorder %s924_s18, %s924_s18 }
  0x13   :  { %p931_p8 = por %p930_p7, %p929_p6 }
  0x15   :  { %p932_p9 = pnand %p931_p8, %p925_p5 }
  0x17   :  { %935 = shalt.err (!%p932_p9)
}
  0x18   :  { %33 = dma.hbm_to_vmem [thread:$0]  %s1001_s1, 2048, %s28_s17, [#allocation6], %s963_s12, %s963_s12, %s964_s13  }
  0x19   :  { %956 = dma.done.wait [#allocation3], 8192  }
  0x1a   :  { %957 = vsyncadd [#allocation3], 4294959104 }
  0x1b   :  { %958 = dma.done.wait [#allocation6], 2048  }
  0x1c   :  { %959 = vsyncadd [#allocation6], 4294965248  ;;  %v119_v0 = vld [vmem:[#allocation5 + $0x78] sm:$0xff]  ;;  %v118_v1 = vld [vmem:[#allocation5 + $0x70] sm:$0xff]  ;;  %s966_s0 = smov [#allocation7]  }
  0x1d   :  { %731 = vmatprep.subr.mxu0 %v119_v0  ;;  %859 = vmatprep.subr.mxu1 %v119_v0  ;;  %v117_v2 = vld [vmem:[#allocation5 + $0x68] sm:$0xff]  ;;  %v116_v3 = vld [vmem:[#allocation5 + $0x60] sm:$0xff]  ;;  %v115_v4 = vld [vmem:[#allocation5 + $0x58] sm:$0xff]  ;;  %s638_s1 = sshll.u32 %s966_s0, 4  ;;  %s639_s1 = int_to_ptr.vmem [resolvable:$true] %s638_s1 }
  0x1e   :  { %732 = vmatpush3.msra.mxu0 %v119_v0  ;;  %875 = vmatpush3.msra.mxu1 %v119_v0  ;;  %v114_v5 = vld [vmem:[#allocation5 + $0x50] sm:$0xff]  ;;  %v113_v6 = vld [vmem:[#allocation5 + $0x48] sm:$0xff]  ;;  %v112_v7 = vld [vmem:[#allocation5 + $0x40] sm:$0xff]  ;;  %s936_s21 = scalar_lea.vmem %s639_s1, 8192  ;;  %p941_p11 = scmp.lt.s32.totalorder %s639_s1, %s639_s1 }
  0x1f   :  { %733 = vmatprep.subr.mxu0 %v118_v1  ;;  %860 = vmatprep.subr.mxu1 %v118_v1  ;;  %v111_v8 = vld [vmem:[#allocation5 + $0x38] sm:$0xff]  ;;  %v110_v9 = vld [vmem:[#allocation5 + $0x30] sm:$0xff]  ;;  %v109_v10 = vld [vmem:[#allocation5 + $0x28] sm:$0xff]  ;;  %p937_p10 = scmp.ne.s32.totalorder %s639_s1, %s936_s21  ;;  %p942_p12 = scmp.lt.s32.totalorder %s936_s21, %s936_s21 }
  0x20   :  { %734 = vmatpush3.msra.mxu0 %v118_v1  ;;  %876 = vmatpush3.msra.mxu1 %v118_v1  ;;  %v108_v11 = vld [vmem:[#allocation5 + $0x20] sm:$0xff]  ;;  %v107_v12 = vld [vmem:[#allocation5 + $0x18] sm:$0xff]  ;;  %v106_v13 = vld [vmem:[#allocation5 + $0x10] sm:$0xff] }
  0x21   :  { %735 = vmatprep.subr.mxu0 %v117_v2  ;;  %861 = vmatprep.subr.mxu1 %v117_v2  ;;  %v105_v14 = vld [vmem:[#allocation5 + $0x8] sm:$0xff]  ;;  %v104_v15 = vld [vmem:[#allocation5] sm:$0xff]  ;;  %v42_v20 = vld [vmem:[#allocation2 + $0x10] sm:$0xff]  ;;  %p943_p13 = por %p942_p12, %p941_p11 }
  0x22   :  { %736 = vmatpush3.msra.mxu0 %v117_v2  ;;  %877 = vmatpush3.msra.mxu1 %v117_v2  ;;  %v40_v16 = vld [vmem:[#allocation2] sm:$0xff]  ;;  %v41_v18 = vld [vmem:[#allocation2 + $0x8] sm:$0xff]  ;;  %v74_v21 = vld [vmem:[#allocation2 + $0x110] sm:$0xff] }
  0x23   :  { %737 = vmatprep.subr.mxu0 %v116_v3  ;;  %862 = vmatprep.subr.mxu1 %v116_v3  ;;  %v72_v17 = vld [vmem:[#allocation2 + $0x100] sm:$0xff]  ;;  %v73_v19 = vld [vmem:[#allocation2 + $0x108] sm:$0xff]  ;;  %v43_v22 = vld [vmem:[#allocation2 + $0x18] sm:$0xff]  ;;  %p944_p0 = pnand %p943_p13, %p937_p10 }
  0x24   :  { %738 = vmatpush3.msra.mxu0 %v116_v3  ;;  %878 = vmatpush3.msra.mxu1 %v116_v3  ;;  %v75_v23 = vld [vmem:[#allocation2 + $0x118] sm:$0xff]  ;;  %v44_v24 = vld [vmem:[#allocation2 + $0x20] sm:$0xff]  ;;  %v45_v26 = vld [vmem:[#allocation2 + $0x28] sm:$0xff] }
  0x25   :  { %739 = vmatprep.subr.mxu0 %v115_v4  ;;  %863 = vmatprep.subr.mxu1 %v115_v4  ;;  %v76_v25 = vld [vmem:[#allocation2 + $0x120] sm:$0xff]  ;;  %v77_v27 = vld [vmem:[#allocation2 + $0x128] sm:$0xff]  ;;  %v46_v28 = vld [vmem:[#allocation2 + $0x30] sm:$0xff] }
  0x26   :  { %740 = vmatpush3.msra.mxu0 %v115_v4  ;;  %879 = vmatpush3.msra.mxu1 %v115_v4  ;;  %v78_v29 = vld [vmem:[#allocation2 + $0x130] sm:$0xff]  ;;  %v47_v30 = vld [vmem:[#allocation2 + $0x38] sm:$0xff]  ;;  %v48_v32 = vld [vmem:[#allocation2 + $0x40] sm:$0xff] }
  0x27   :  { %741 = vmatprep.subr.mxu0 %v114_v5  ;;  %864 = vmatprep.subr.mxu1 %v114_v5  ;;  %v79_v31 = vld [vmem:[#allocation2 + $0x138] sm:$0xff]  ;;  %v80_v33 = vld [vmem:[#allocation2 + $0x140] sm:$0xff]  ;;  %v49_v34 = vld [vmem:[#allocation2 + $0x48] sm:$0xff] }
  0x28   :  { %742 = vmatpush3.msra.mxu0 %v114_v5  ;;  %880 = vmatpush3.msra.mxu1 %v114_v5  ;;  %v81_v35 = vld [vmem:[#allocation2 + $0x148] sm:$0xff]  ;;  %v50_v36 = vld [vmem:[#allocation2 + $0x50] sm:$0xff]  ;;  %v51_v38 = vld [vmem:[#allocation2 + $0x58] sm:$0xff] }
  0x29   :  { %743 = vmatprep.subr.mxu0 %v113_v6  ;;  %865 = vmatprep.subr.mxu1 %v113_v6  ;;  %v82_v37 = vld [vmem:[#allocation2 + $0x150] sm:$0xff]  ;;  %v83_v39 = vld [vmem:[#allocation2 + $0x158] sm:$0xff]  ;;  %v52_v40 = vld [vmem:[#allocation2 + $0x60] sm:$0xff] }
  0x2a   :  { %744 = vmatpush3.msra.mxu0 %v113_v6  ;;  %881 = vmatpush3.msra.mxu1 %v113_v6  ;;  %v84_v41 = vld [vmem:[#allocation2 + $0x160] sm:$0xff]  ;;  %v53_v42 = vld [vmem:[#allocation2 + $0x68] sm:$0xff]  ;;  %v54_v44 = vld [vmem:[#allocation2 + $0x70] sm:$0xff] }
  0x2b   :  { %745 = vmatprep.subr.mxu0 %v112_v7  ;;  %866 = vmatprep.subr.mxu1 %v112_v7  ;;  %v85_v43 = vld [vmem:[#allocation2 + $0x168] sm:$0xff]  ;;  %v86_v45 = vld [vmem:[#allocation2 + $0x170] sm:$0xff]  ;;  %v55_v46 = vld [vmem:[#allocation2 + $0x78] sm:$0xff] }
  0x2c   :  { %746 = vmatpush3.msra.mxu0 %v112_v7  ;;  %882 = vmatpush3.msra.mxu1 %v112_v7  ;;  %v87_v47 = vld [vmem:[#allocation2 + $0x178] sm:$0xff]  ;;  %v56_v48 = vld [vmem:[#allocation2 + $0x80] sm:$0xff]  ;;  %v57_v50 = vld [vmem:[#allocation2 + $0x88] sm:$0xff] }
  0x2d   :  { %747 = vmatprep.subr.mxu0 %v111_v8  ;;  %867 = vmatprep.subr.mxu1 %v111_v8  ;;  %v88_v49 = vld [vmem:[#allocation2 + $0x180] sm:$0xff]  ;;  %v89_v51 = vld [vmem:[#allocation2 + $0x188] sm:$0xff]  ;;  %v58_v52 = vld [vmem:[#allocation2 + $0x90] sm:$0xff] }
  0x2e   :  { %748 = vmatpush3.msra.mxu0 %v111_v8  ;;  %883 = vmatpush3.msra.mxu1 %v111_v8  ;;  %v90_v53 = vld [vmem:[#allocation2 + $0x190] sm:$0xff]  ;;  %v59_v54 = vld [vmem:[#allocation2 + $0x98] sm:$0xff]  ;;  %v60_v56 = vld [vmem:[#allocation2 + $0xa0] sm:$0xff] }
  0x2f   :  { %749 = vmatprep.subr.mxu0 %v110_v9  ;;  %868 = vmatprep.subr.mxu1 %v110_v9  ;;  %v91_v55 = vld [vmem:[#allocation2 + $0x198] sm:$0xff]  ;;  %v92_v57 = vld [vmem:[#allocation2 + $0x1a0] sm:$0xff]  ;;  %v61_v58 = vld [vmem:[#allocation2 + $0xa8] sm:$0xff] }
  0x30   :  { %750 = vmatpush3.msra.mxu0 %v110_v9  ;;  %884 = vmatpush3.msra.mxu1 %v110_v9  ;;  %v93_v59 = vld [vmem:[#allocation2 + $0x1a8] sm:$0xff]  ;;  %v62_v60 = vld [vmem:[#allocation2 + $0xb0] sm:$0xff]  ;;  %v63_v62 = vld [vmem:[#allocation2 + $0xb8] sm:$0xff] }
  0x31   :  { %751 = vmatprep.subr.mxu0 %v109_v10  ;;  %869 = vmatprep.subr.mxu1 %v109_v10  ;;  %v94_v61 = vld [vmem:[#allocation2 + $0x1b0] sm:$0xff]  ;;  %v95_v63 = vld [vmem:[#allocation2 + $0x1b8] sm:$0xff]  ;;  %v64_v0 = vld [vmem:[#allocation2 + $0xc0] sm:$0xff] }
  0x32   :  { %752 = vmatpush3.msra.mxu0 %v109_v10  ;;  %885 = vmatpush3.msra.mxu1 %v109_v10  ;;  %v96_v1 = vld [vmem:[#allocation2 + $0x1c0] sm:$0xff]  ;;  %v65_v2 = vld [vmem:[#allocation2 + $0xc8] sm:$0xff]  ;;  %v66_v4 = vld [vmem:[#allocation2 + $0xd0] sm:$0xff] }
  0x33   :  { %753 = vmatprep.subr.mxu0 %v108_v11  ;;  %870 = vmatprep.subr.mxu1 %v108_v11  ;;  %v97_v3 = vld [vmem:[#allocation2 + $0x1c8] sm:$0xff]  ;;  %v98_v5 = vld [vmem:[#allocation2 + $0x1d0] sm:$0xff]  ;;  %v67_v6 = vld [vmem:[#allocation2 + $0xd8] sm:$0xff] }
  0x34   :  { %754 = vmatpush3.msra.mxu0 %v108_v11  ;;  %886 = vmatpush3.msra.mxu1 %v108_v11  ;;  %v99_v7 = vld [vmem:[#allocation2 + $0x1d8] sm:$0xff]  ;;  %v68_v8 = vld [vmem:[#allocation2 + $0xe0] sm:$0xff]  ;;  %v69_v10 = vld [vmem:[#allocation2 + $0xe8] sm:$0xff] }
  0x35   :  { %755 = vmatprep.subr.mxu0 %v107_v12  ;;  %871 = vmatprep.subr.mxu1 %v107_v12  ;;  %v100_v9 = vld [vmem:[#allocation2 + $0x1e0] sm:$0xff]  ;;  %v101_v11 = vld [vmem:[#allocation2 + $0x1e8] sm:$0xff] }
  0x36   :  { %756 = vmatpush3.msra.mxu0 %v107_v12  ;;  %887 = vmatpush3.msra.mxu1 %v107_v12  ;;  %v70_v12 = vld [vmem:[#allocation2 + $0xf0] sm:$0xff] }
  0x37   :  { %757 = vmatprep.subr.mxu0 %v106_v13  ;;  %872 = vmatprep.subr.mxu1 %v106_v13 }
  0x38   :  { %758 = vmatpush3.msra.mxu0 %v106_v13  ;;  %888 = vmatpush3.msra.mxu1 %v106_v13  ;;  %v102_v13 = vld [vmem:[#allocation2 + $0x1f0] sm:$0xff] }
  0x39   :  { %759 = vmatprep.subr.mxu0 %v105_v14  ;;  %873 = vmatprep.subr.mxu1 %v105_v14 }
  0x3a   :  { %760 = vmatpush3.msra.mxu0 %v105_v14  ;;  %889 = vmatpush3.msra.mxu1 %v105_v14  ;;  %v71_v14 = vld [vmem:[#allocation2 + $0xf8] sm:$0xff] }
  0x3b   :  { %761 = vmatprep.subr.mxu0 %v104_v15  ;;  %874 = vmatprep.subr.mxu1 %v104_v15 }
  0x3c   :  { %762 = vmatpush3.msra.mxu0 %v104_v15  ;;  %890 = vmatpush3.msra.mxu1 %v104_v15  ;;  %v103_v15 = vld [vmem:[#allocation2 + $0x1f8] sm:$0xff] }
  0x3d   :  { %763 = vmatprep.mubr.f32.mxu0 %v40_v16  ;;  %811 = vmatprep.mubr.f32.mxu1 %v72_v17 }
  0x3e   :  { %764 = vmatmul.mubr.f32.vlgmr.msra.gmra.mxu0 %v41_v18  ;;  %812 = vmatmul.mubr.f32.vlgmr.msra.gmra.mxu1 %v73_v19 }
  0x3f   :  { %766 = vmatprep.mubr.f32.mxu0 %v42_v20  ;;  %814 = vmatprep.mubr.f32.mxu1 %v74_v21 }
  0x42   :  { %767 = vmatmul.mubr.f32.gmra.mxu0 %v43_v22  ;;  %815 = vmatmul.mubr.f32.gmra.mxu1 %v75_v23 }
  0x43   :  { %769 = vmatprep.mubr.f32.mxu0 %v44_v24  ;;  %817 = vmatprep.mubr.f32.mxu1 %v76_v25 }
  0x46   :  { %770 = vmatmul.mubr.f32.gmra.mxu0 %v45_v26  ;;  %818 = vmatmul.mubr.f32.gmra.mxu1 %v77_v27 }
  0x47   :  { %772 = vmatprep.mubr.f32.mxu0 %v46_v28  ;;  %820 = vmatprep.mubr.f32.mxu1 %v78_v29 }
  0x4a   :  { %773 = vmatmul.mubr.f32.gmra.mxu0 %v47_v30  ;;  %821 = vmatmul.mubr.f32.gmra.mxu1 %v79_v31 }
  0x4b   :  { %775 = vmatprep.mubr.f32.mxu0 %v48_v32  ;;  %823 = vmatprep.mubr.f32.mxu1 %v80_v33 }
  0x4e   :  { %776 = vmatmul.mubr.f32.gmra.mxu0 %v49_v34  ;;  %824 = vmatmul.mubr.f32.gmra.mxu1 %v81_v35 }
  0x4f   :  { %778 = vmatprep.mubr.f32.mxu0 %v50_v36  ;;  %826 = vmatprep.mubr.f32.mxu1 %v82_v37 }
  0x52   :  { %779 = vmatmul.mubr.f32.gmra.mxu0 %v51_v38  ;;  %827 = vmatmul.mubr.f32.gmra.mxu1 %v83_v39 }
  0x53   :  { %781 = vmatprep.mubr.f32.mxu0 %v52_v40  ;;  %829 = vmatprep.mubr.f32.mxu1 %v84_v41 }
  0x56   :  { %782 = vmatmul.mubr.f32.gmra.mxu0 %v53_v42  ;;  %830 = vmatmul.mubr.f32.gmra.mxu1 %v85_v43 }
  0x57   :  { %784 = vmatprep.mubr.f32.mxu0 %v54_v44  ;;  %832 = vmatprep.mubr.f32.mxu1 %v86_v45 }
  0x5a   :  { %785 = vmatmul.mubr.f32.gmra.mxu0 %v55_v46  ;;  %833 = vmatmul.mubr.f32.gmra.mxu1 %v87_v47 }
  0x5b   :  { %787 = vmatprep.mubr.f32.mxu0 %v56_v48  ;;  %835 = vmatprep.mubr.f32.mxu1 %v88_v49 }
  0x5e   :  { %788 = vmatmul.mubr.f32.gmra.mxu0 %v57_v50  ;;  %836 = vmatmul.mubr.f32.gmra.mxu1 %v89_v51 }
  0x5f   :  { %790 = vmatprep.mubr.f32.mxu0 %v58_v52  ;;  %838 = vmatprep.mubr.f32.mxu1 %v90_v53 }
  0x62   :  { %791 = vmatmul.mubr.f32.gmra.mxu0 %v59_v54  ;;  %839 = vmatmul.mubr.f32.gmra.mxu1 %v91_v55 }
  0x63   :  { %793 = vmatprep.mubr.f32.mxu0 %v60_v56  ;;  %841 = vmatprep.mubr.f32.mxu1 %v92_v57 }
  0x66   :  { %794 = vmatmul.mubr.f32.gmra.mxu0 %v61_v58  ;;  %842 = vmatmul.mubr.f32.gmra.mxu1 %v93_v59 }
  0x67   :  { %796 = vmatprep.mubr.f32.mxu0 %v62_v60  ;;  %844 = vmatprep.mubr.f32.mxu1 %v94_v61 }
  0x6a   :  { %797 = vmatmul.mubr.f32.gmra.mxu0 %v63_v62  ;;  %845 = vmatmul.mubr.f32.gmra.mxu1 %v95_v63 }
  0x6b   :  { %799 = vmatprep.mubr.f32.mxu0 %v64_v0  ;;  %847 = vmatprep.mubr.f32.mxu1 %v96_v1 }
  0x6e   :  { %800 = vmatmul.mubr.f32.gmra.mxu0 %v65_v2  ;;  %848 = vmatmul.mubr.f32.gmra.mxu1 %v97_v3 }
  0x6f   :  { %802 = vmatprep.mubr.f32.mxu0 %v66_v4  ;;  %850 = vmatprep.mubr.f32.mxu1 %v98_v5 }
  0x72   :  { %803 = vmatmul.mubr.f32.gmra.mxu0 %v67_v6  ;;  %851 = vmatmul.mubr.f32.gmra.mxu1 %v99_v7 }
  0x73   :  { %805 = vmatprep.mubr.f32.mxu0 %v68_v8  ;;  %853 = vmatprep.mubr.f32.mxu1 %v100_v9 }
  0x76   :  { %806 = vmatmul.mubr.f32.gmra.mxu0 %v69_v10  ;;  %854 = vmatmul.mubr.f32.gmra.mxu1 %v101_v11 }
  0x77   :  { %808 = vmatprep.mubr.f32.mxu0 %v70_v12  ;;  %856 = vmatprep.mubr.f32.mxu1 %v102_v13 }
  0x7a   :  { %809 = vmatmul.mubr.f32.gmra.mxu0 %v71_v14  ;;  %857 = vmatmul.mubr.f32.gmra.mxu1 %v103_v15 }
  0xfe   :  { %v765_v16 = vpop.f32.mrf.mxu0  ;;  %v813_v17 = vpop.f32.mrf.mxu1 }
  0xff   :  { %v506_v18 = vmax.f32 %v765_v16, 0.0  ;;  %v538_v19 = vmax.f32 %v813_v17, 0.0 }
 0x100   :  { %v186_v20 = vpop.f32.mrf.mxu0  ;;  %v346_v21 = vpop.f32.mrf.mxu1 }
 0x101   :  { %570 = vst [vmem:[#allocation7 + $0x8] sm:$0xff] %v506_v18  ;;  %602 = vst [vmem:[#allocation7 + $0x108] sm:$0xff] %v538_v19  ;;  %v505_v22 = vmax.f32 %v186_v20, 0.0  ;;  %v537_v23 = vmax.f32 %v346_v21, 0.0 }
 0x102   :  { %v768_v24 = vpop.f32.mrf.mxu0  ;;  %v816_v25 = vpop.f32.mrf.mxu1 }
 0x103   :  { %569 = vst [vmem:[#allocation7] sm:$0xff] %v505_v22  ;;  %601 = vst [vmem:[#allocation7 + $0x100] sm:$0xff] %v537_v23  ;;  %v508_v26 = vmax.f32 %v768_v24, 0.0  ;;  %v540_v27 = vmax.f32 %v816_v25, 0.0 }
 0x104   :  { %v196_v28 = vpop.f32.mrf.mxu0  ;;  %v356_v29 = vpop.f32.mrf.mxu1 }
 0x105   :  { %572 = vst [vmem:[#allocation7 + $0x18] sm:$0xff] %v508_v26  ;;  %604 = vst [vmem:[#allocation7 + $0x118] sm:$0xff] %v540_v27  ;;  %v507_v30 = vmax.f32 %v196_v28, 0.0  ;;  %v539_v31 = vmax.f32 %v356_v29, 0.0 }
 0x106   :  { %v771_v32 = vpop.f32.mrf.mxu0  ;;  %v819_v33 = vpop.f32.mrf.mxu1 }
 0x107   :  { %571 = vst [vmem:[#allocation7 + $0x10] sm:$0xff] %v507_v30  ;;  %603 = vst [vmem:[#allocation7 + $0x110] sm:$0xff] %v539_v31  ;;  %v510_v34 = vmax.f32 %v771_v32, 0.0  ;;  %v542_v35 = vmax.f32 %v819_v33, 0.0 }
 0x108   :  { %v206_v36 = vpop.f32.mrf.mxu0  ;;  %v366_v37 = vpop.f32.mrf.mxu1 }
 0x109   :  { %574 = vst [vmem:[#allocation7 + $0x28] sm:$0xff] %v510_v34  ;;  %606 = vst [vmem:[#allocation7 + $0x128] sm:$0xff] %v542_v35  ;;  %v509_v38 = vmax.f32 %v206_v36, 0.0  ;;  %v541_v39 = vmax.f32 %v366_v37, 0.0 }
 0x10a   :  { %v774_v40 = vpop.f32.mrf.mxu0  ;;  %v822_v41 = vpop.f32.mrf.mxu1 }
 0x10b   :  { %573 = vst [vmem:[#allocation7 + $0x20] sm:$0xff] %v509_v38  ;;  %605 = vst [vmem:[#allocation7 + $0x120] sm:$0xff] %v541_v39  ;;  %v512_v42 = vmax.f32 %v774_v40, 0.0  ;;  %v544_v43 = vmax.f32 %v822_v41, 0.0 }
 0x10c   :  { %v216_v44 = vpop.f32.mrf.mxu0  ;;  %v376_v45 = vpop.f32.mrf.mxu1 }
 0x10d   :  { %576 = vst [vmem:[#allocation7 + $0x38] sm:$0xff] %v512_v42  ;;  %608 = vst [vmem:[#allocation7 + $0x138] sm:$0xff] %v544_v43  ;;  %v511_v46 = vmax.f32 %v216_v44, 0.0  ;;  %v543_v47 = vmax.f32 %v376_v45, 0.0 }
 0x10e   :  { %v777_v48 = vpop.f32.mrf.mxu0  ;;  %v825_v49 = vpop.f32.mrf.mxu1 }
 0x10f   :  { %575 = vst [vmem:[#allocation7 + $0x30] sm:$0xff] %v511_v46  ;;  %607 = vst [vmem:[#allocation7 + $0x130] sm:$0xff] %v543_v47  ;;  %v514_v50 = vmax.f32 %v777_v48, 0.0  ;;  %v546_v51 = vmax.f32 %v825_v49, 0.0 }
 0x110   :  { %v226_v52 = vpop.f32.mrf.mxu0  ;;  %v386_v53 = vpop.f32.mrf.mxu1 }
 0x111   :  { %578 = vst [vmem:[#allocation7 + $0x48] sm:$0xff] %v514_v50  ;;  %610 = vst [vmem:[#allocation7 + $0x148] sm:$0xff] %v546_v51  ;;  %v513_v54 = vmax.f32 %v226_v52, 0.0  ;;  %v545_v55 = vmax.f32 %v386_v53, 0.0 }
 0x112   :  { %v780_v56 = vpop.f32.mrf.mxu0  ;;  %v828_v57 = vpop.f32.mrf.mxu1 }
 0x113   :  { %577 = vst [vmem:[#allocation7 + $0x40] sm:$0xff] %v513_v54  ;;  %609 = vst [vmem:[#allocation7 + $0x140] sm:$0xff] %v545_v55  ;;  %v516_v58 = vmax.f32 %v780_v56, 0.0  ;;  %v548_v59 = vmax.f32 %v828_v57, 0.0 }
 0x114   :  { %v236_v60 = vpop.f32.mrf.mxu0  ;;  %v396_v61 = vpop.f32.mrf.mxu1 }
 0x115   :  { %580 = vst [vmem:[#allocation7 + $0x58] sm:$0xff] %v516_v58  ;;  %612 = vst [vmem:[#allocation7 + $0x158] sm:$0xff] %v548_v59  ;;  %v515_v62 = vmax.f32 %v236_v60, 0.0  ;;  %v547_v63 = vmax.f32 %v396_v61, 0.0 }
 0x116   :  { %v783_v0 = vpop.f32.mrf.mxu0  ;;  %v831_v1 = vpop.f32.mrf.mxu1 }
 0x117   :  { %579 = vst [vmem:[#allocation7 + $0x50] sm:$0xff] %v515_v62  ;;  %611 = vst [vmem:[#allocation7 + $0x150] sm:$0xff] %v547_v63  ;;  %v518_v2 = vmax.f32 %v783_v0, 0.0  ;;  %v550_v3 = vmax.f32 %v831_v1, 0.0 }
 0x118   :  { %v246_v4 = vpop.f32.mrf.mxu0  ;;  %v406_v5 = vpop.f32.mrf.mxu1 }
 0x119   :  { %582 = vst [vmem:[#allocation7 + $0x68] sm:$0xff] %v518_v2  ;;  %614 = vst [vmem:[#allocation7 + $0x168] sm:$0xff] %v550_v3  ;;  %v517_v6 = vmax.f32 %v246_v4, 0.0  ;;  %v549_v7 = vmax.f32 %v406_v5, 0.0 }
 0x11a   :  { %v786_v8 = vpop.f32.mrf.mxu0  ;;  %v834_v9 = vpop.f32.mrf.mxu1 }
 0x11b   :  { %581 = vst [vmem:[#allocation7 + $0x60] sm:$0xff] %v517_v6  ;;  %613 = vst [vmem:[#allocation7 + $0x160] sm:$0xff] %v549_v7  ;;  %v520_v10 = vmax.f32 %v786_v8, 0.0  ;;  %v552_v11 = vmax.f32 %v834_v9, 0.0 }
 0x11c   :  { %v256_v12 = vpop.f32.mrf.mxu0  ;;  %v416_v13 = vpop.f32.mrf.mxu1 }
 0x11d   :  { %584 = vst [vmem:[#allocation7 + $0x78] sm:$0xff] %v520_v10  ;;  %616 = vst [vmem:[#allocation7 + $0x178] sm:$0xff] %v552_v11  ;;  %v519_v14 = vmax.f32 %v256_v12, 0.0  ;;  %v551_v15 = vmax.f32 %v416_v13, 0.0 }
 0x11e   :  { %v789_v16 = vpop.f32.mrf.mxu0  ;;  %v837_v17 = vpop.f32.mrf.mxu1 }
 0x11f   :  { %583 = vst [vmem:[#allocation7 + $0x70] sm:$0xff] %v519_v14  ;;  %615 = vst [vmem:[#allocation7 + $0x170] sm:$0xff] %v551_v15  ;;  %v522_v18 = vmax.f32 %v789_v16, 0.0  ;;  %v554_v19 = vmax.f32 %v837_v17, 0.0 }
 0x120   :  { %v266_v20 = vpop.f32.mrf.mxu0  ;;  %v426_v21 = vpop.f32.mrf.mxu1 }
 0x121   :  { %586 = vst [vmem:[#allocation7 + $0x88] sm:$0xff] %v522_v18  ;;  %618 = vst [vmem:[#allocation7 + $0x188] sm:$0xff] %v554_v19  ;;  %v521_v22 = vmax.f32 %v266_v20, 0.0  ;;  %v553_v23 = vmax.f32 %v426_v21, 0.0 }
 0x122   :  { %v792_v24 = vpop.f32.mrf.mxu0  ;;  %v840_v25 = vpop.f32.mrf.mxu1 }
 0x123   :  { %585 = vst [vmem:[#allocation7 + $0x80] sm:$0xff] %v521_v22  ;;  %617 = vst [vmem:[#allocation7 + $0x180] sm:$0xff] %v553_v23  ;;  %v524_v26 = vmax.f32 %v792_v24, 0.0  ;;  %v556_v27 = vmax.f32 %v840_v25, 0.0 }
 0x124   :  { %v276_v28 = vpop.f32.mrf.mxu0  ;;  %v436_v29 = vpop.f32.mrf.mxu1 }
 0x125   :  { %588 = vst [vmem:[#allocation7 + $0x98] sm:$0xff] %v524_v26  ;;  %620 = vst [vmem:[#allocation7 + $0x198] sm:$0xff] %v556_v27  ;;  %v523_v30 = vmax.f32 %v276_v28, 0.0  ;;  %v555_v31 = vmax.f32 %v436_v29, 0.0 }
 0x126   :  { %v795_v32 = vpop.f32.mrf.mxu0  ;;  %v843_v33 = vpop.f32.mrf.mxu1 }
 0x127   :  { %587 = vst [vmem:[#allocation7 + $0x90] sm:$0xff] %v523_v30  ;;  %619 = vst [vmem:[#allocation7 + $0x190] sm:$0xff] %v555_v31  ;;  %v526_v34 = vmax.f32 %v795_v32, 0.0  ;;  %v558_v35 = vmax.f32 %v843_v33, 0.0 }
 0x128   :  { %v286_v36 = vpop.f32.mrf.mxu0  ;;  %v446_v37 = vpop.f32.mrf.mxu1 }
 0x129   :  { %590 = vst [vmem:[#allocation7 + $0xa8] sm:$0xff] %v526_v34  ;;  %622 = vst [vmem:[#allocation7 + $0x1a8] sm:$0xff] %v558_v35  ;;  %v525_v38 = vmax.f32 %v286_v36, 0.0  ;;  %v557_v39 = vmax.f32 %v446_v37, 0.0 }
 0x12a   :  { %v798_v40 = vpop.f32.mrf.mxu0  ;;  %v846_v41 = vpop.f32.mrf.mxu1 }
 0x12b   :  { %589 = vst [vmem:[#allocation7 + $0xa0] sm:$0xff] %v525_v38  ;;  %621 = vst [vmem:[#allocation7 + $0x1a0] sm:$0xff] %v557_v39  ;;  %v528_v42 = vmax.f32 %v798_v40, 0.0  ;;  %v560_v43 = vmax.f32 %v846_v41, 0.0 }
 0x12c   :  { %v296_v44 = vpop.f32.mrf.mxu0  ;;  %v456_v45 = vpop.f32.mrf.mxu1 }
 0x12d   :  { %592 = vst [vmem:[#allocation7 + $0xb8] sm:$0xff] %v528_v42  ;;  %624 = vst [vmem:[#allocation7 + $0x1b8] sm:$0xff] %v560_v43  ;;  %v527_v46 = vmax.f32 %v296_v44, 0.0  ;;  %v559_v47 = vmax.f32 %v456_v45, 0.0 }
 0x12e   :  { %v801_v48 = vpop.f32.mrf.mxu0  ;;  %v849_v49 = vpop.f32.mrf.mxu1 }
 0x12f   :  { %591 = vst [vmem:[#allocation7 + $0xb0] sm:$0xff] %v527_v46  ;;  %623 = vst [vmem:[#allocation7 + $0x1b0] sm:$0xff] %v559_v47  ;;  %v530_v50 = vmax.f32 %v801_v48, 0.0  ;;  %v562_v51 = vmax.f32 %v849_v49, 0.0 }
 0x130   :  { %v306_v52 = vpop.f32.mrf.mxu0  ;;  %v466_v53 = vpop.f32.mrf.mxu1 }
 0x131   :  { %594 = vst [vmem:[#allocation7 + $0xc8] sm:$0xff] %v530_v50  ;;  %626 = vst [vmem:[#allocation7 + $0x1c8] sm:$0xff] %v562_v51  ;;  %v529_v54 = vmax.f32 %v306_v52, 0.0  ;;  %v561_v55 = vmax.f32 %v466_v53, 0.0 }
 0x132   :  { %v804_v56 = vpop.f32.mrf.mxu0  ;;  %v852_v57 = vpop.f32.mrf.mxu1 }
 0x133   :  { %593 = vst [vmem:[#allocation7 + $0xc0] sm:$0xff] %v529_v54  ;;  %625 = vst [vmem:[#allocation7 + $0x1c0] sm:$0xff] %v561_v55  ;;  %v532_v58 = vmax.f32 %v804_v56, 0.0  ;;  %v564_v59 = vmax.f32 %v852_v57, 0.0 }
 0x134   :  { %v316_v60 = vpop.f32.mrf.mxu0  ;;  %v476_v61 = vpop.f32.mrf.mxu1 }
 0x135   :  { %596 = vst [vmem:[#allocation7 + $0xd8] sm:$0xff] %v532_v58  ;;  %628 = vst [vmem:[#allocation7 + $0x1d8] sm:$0xff] %v564_v59  ;;  %v531_v62 = vmax.f32 %v316_v60, 0.0  ;;  %v563_v63 = vmax.f32 %v476_v61, 0.0 }
 0x136   :  { %v807_v0 = vpop.f32.mrf.mxu0  ;;  %v855_v1 = vpop.f32.mrf.mxu1 }
 0x137   :  { %595 = vst [vmem:[#allocation7 + $0xd0] sm:$0xff] %v531_v62  ;;  %627 = vst [vmem:[#allocation7 + $0x1d0] sm:$0xff] %v563_v63  ;;  %v534_v2 = vmax.f32 %v807_v0, 0.0  ;;  %v566_v3 = vmax.f32 %v855_v1, 0.0 }
 0x138   :  { %v326_v4 = vpop.f32.mrf.mxu0  ;;  %v486_v5 = vpop.f32.mrf.mxu1 }
 0x139   :  { %598 = vst [vmem:[#allocation7 + $0xe8] sm:$0xff] %v534_v2  ;;  %630 = vst [vmem:[#allocation7 + $0x1e8] sm:$0xff] %v566_v3  ;;  %v533_v6 = vmax.f32 %v326_v4, 0.0  ;;  %v565_v7 = vmax.f32 %v486_v5, 0.0 }
 0x13a   :  { %v810_v8 = vpop.f32.mrf.mxu0  ;;  %v858_v9 = vpop.f32.mrf.mxu1 }
 0x13b   :  { %597 = vst [vmem:[#allocation7 + $0xe0] sm:$0xff] %v533_v6  ;;  %629 = vst [vmem:[#allocation7 + $0x1e0] sm:$0xff] %v565_v7  ;;  %v536_v10 = vmax.f32 %v810_v8, 0.0  ;;  %v568_v11 = vmax.f32 %v858_v9, 0.0 }
 0x13c   :  { %v336_v12 = vpop.f32.mrf.mxu0  ;;  %v496_v13 = vpop.f32.mrf.mxu1 }
 0x13d   :  { %600 = vst [vmem:[#allocation7 + $0xf8] sm:$0xff] %v536_v10  ;;  %632 = vst [vmem:[#allocation7 + $0x1f8] sm:$0xff] %v568_v11  ;;  %v535_v14 = vmax.f32 %v336_v12, 0.0  ;;  %v567_v15 = vmax.f32 %v496_v13, 0.0 }
 0x13f   :  { %599 = vst [vmem:[#allocation7 + $0xf0] sm:$0xff] %v535_v14  ;;  %631 = vst [vmem:[#allocation7 + $0x1f0] sm:$0xff] %v567_v15 }
 0x140   :  { %947 = shalt.err (!%p944_p0)
}
 0x141   :  { %644 = dma.vmem_to_hbm [thread:$0]  %s639_s1, 8192, %s1002_s2, [#allocation4], %s963_s12, %s963_s12, %s964_s13  }
 0x142   :  { %960 = dma.done.wait [#allocation4], 8192  }
 0x143   :  { %961 = vsyncadd [#allocation4], 4294959104 }
 0x144   :  { %648 = vsyncpa [#allocation3], 1 }
 0x145   :  { %649 = vsyncpa [#allocation6], 1 }
 0x146   :  { %650 = vsyncpa [#allocation4], 1 }

</bundles_post_ra>
